<compile_context>
chip_gen: v7x
topology: tpu7x:2x2x1
jax: 0.10.0
libtpu: 0.0.40
codegen_flags: <defaults>
</compile_context>

<pallas_src>
import jax
import jax.numpy as jnp
from jax.experimental import pallas as pl
from jax.experimental.pallas import tpu as pltpu

HIDDEN = 50          # spec: torch.nn.Linear(input_size, 50)
HIDDEN_PAD = 128     # zero-padded hidden width (lane-dense, mathematically identical)
BLOCK_ROWS = 256     # row tile for the grid


def _round_up(n, m):
    return ((n + m - 1) // m) * m


# ----------------------------------------------------------------------------
# Kernel: fused Linear -> ReLU -> Linear on a (tile, d_in) row block
# ----------------------------------------------------------------------------
def _mlp_kernel(x_ref, w1_ref, b1_ref, w2_ref, b2_ref, o_ref):
    # (tile, d_in) @ (d_in, H_PAD) -> +bias -> ReLU -> @ (H_PAD, d_out) -> +bias
    h = jnp.dot(x_ref[...], w1_ref[...], preferred_element_type=jnp.float32)
    h = jnp.maximum(h + b1_ref[...], 0.0)
    y = jnp.dot(h, w2_ref[...], preferred_element_type=jnp.float32) + b2_ref[...]
    o_ref[...] = y.astype(o_ref.dtype)


# ----------------------------------------------------------------------------
# Wrapper
# ----------------------------------------------------------------------------
def linear_network_apply(pitch, w1_t, b1, w2_t, b2):
    """pitch: (..., d_in) -> (..., d_out). Weights already transposed/padded."""
    d_in = pitch.shape[-1]
    d_out = w2_t.shape[1]
    lead_shape = pitch.shape[:-1]

    x2d = pitch.reshape(-1, d_in)
    n = x2d.shape[0]

    tile = min(BLOCK_ROWS, _round_up(n, 8))      # row tile, multiple of 8
    n_pad = _round_up(n, tile)
    if n_pad != n:
        x2d = jnp.pad(x2d, ((0, n_pad - n), (0, 0)))

    grid = (n_pad // tile,)

    out = pl.pallas_call(
        _mlp_kernel,
        out_shape=jax.ShapeDtypeStruct((n_pad, d_out), pitch.dtype),
        grid_spec=pltpu.PrefetchScalarGridSpec(
            num_scalar_prefetch=0,
            grid=grid,
            in_specs=[
                pl.BlockSpec((tile, d_in), lambda i: (i, 0)),
                # Weights / biases: full-array blocks, constant index_map
                # -> stay resident in VMEM across grid steps.
                pl.BlockSpec(w1_t.shape, lambda i: (0, 0)),
                pl.BlockSpec(b1.shape, lambda i: (0, 0)),
                pl.BlockSpec(w2_t.shape, lambda i: (0, 0)),
                pl.BlockSpec(b2.shape, lambda i: (0, 0)),
            ],
            out_specs=pl.BlockSpec((tile, d_out), lambda i: (i, 0)),
        ),
        compiler_params=pltpu.CompilerParams(
            dimension_semantics=("parallel",),   # rows shard across v7x TCs
        ),
    )(x2d, w1_t, b1, w2_t, b2)

    out = out[:n]
    return out.reshape(*lead_shape, d_out)


# ----------------------------------------------------------------------------
# Parameter init (PyTorch nn.Linear style uniform bounds), hidden padded to 128
# ----------------------------------------------------------------------------
def _uniform(key, shape, bound):
    return jax.random.uniform(key, shape, jnp.float32, -bound, bound)


def init_params(key, input_size, output_size):
    k1, k2, k3, k4 = jax.random.split(key, 4)

    # linear_0: (input_size -> 50), stored transposed and zero-padded to 128
    b0 = 1.0 / jnp.sqrt(float(input_size))
    w1 = _uniform(k1, (input_size, HIDDEN), b0)           # (d_in, 50)
    b1 = _uniform(k2, (1, HIDDEN), b0)                    # (1, 50)
    w1_t = jnp.zeros((input_size, HIDDEN_PAD), jnp.float32).at[:, :HIDDEN].set(w1)
    b1_p = jnp.zeros((1, HIDDEN_PAD), jnp.float32).at[:, :HIDDEN].set(b1)

    # linear_1: (50 -> output_size), stored transposed; padded rows are zero
    b0 = 1.0 / jnp.sqrt(float(HIDDEN))
    w2 = _uniform(k3, (HIDDEN, output_size), b0)          # (50, d_out)
    b2 = _uniform(k4, (1, output_size), b0)               # (1, d_out)
    w2_t = jnp.zeros((HIDDEN_PAD, output_size), jnp.float32).at[:HIDDEN, :].set(w2)

    return {"w1_t": w1_t, "b1": b1_p, "w2_t": w2_t, "b2": b2}


@jax.jit
def linear_network_forward(params, pitch):
    return linear_network_apply(
        pitch, params["w1_t"], params["b1"], params["w2_t"], params["b2"]
    )


def _reference_forward(params, pitch):
    # Pure-JAX reference (padded weights are mathematically identical).
    h = jnp.maximum(pitch @ params["w1_t"] + params["b1"], 0.0)
    return h @ params["w2_t"] + params["b2"]


# ----------------------------------------------------------------------------
if __name__ == "__main__":
    key = jax.random.PRNGKey(0)
    kp, kx = jax.random.split(key)

    input_size, output_size = 8, 32
    B, T = 2, 8

    params = init_params(kp, input_size, output_size)
    pitch = jax.random.normal(kx, (B, T, input_size), jnp.float32)

    out = linear_network_forward(params, pitch)
    out = jax.block_until_ready(out)

    assert out.shape == (B, T, output_size), out.shape
    assert bool(jnp.all(jnp.isfinite(out)))

    ref = _reference_forward(params, pitch)
    assert bool(jnp.allclose(out, ref, atol=1e-5, rtol=1e-5))

    print("KERNEL_OK")
</pallas_src>

<mosaic_0001>
module attributes {stable_mosaic.version = 11 : i64} {
  func.func @_mlp_kernel(%arg0: i32, %arg1: memref<16x8xf32, #tpu.memory_space<vmem>>, %arg2: memref<8x128xf32, #tpu.memory_space<vmem>>, %arg3: memref<1x128xf32, #tpu.memory_space<vmem>>, %arg4: memref<128x32xf32, #tpu.memory_space<vmem>>, %arg5: memref<1x32xf32, #tpu.memory_space<vmem>>, %arg6: memref<16x32xf32, #tpu.memory_space<vmem>>) attributes {dimension_semantics = [#tpu.dimension_semantics<parallel>], iteration_bounds = array<i64: 1>, scalar_prefetch = 0 : i64, scratch_operands = 0 : i64, tpu.core_type = #tpu.core_type<tc>, window_params = [{transform_indices = @transform_0, window_bounds = array<i64: 16, 8>}, {pipeline_mode = #tpu.pipeline_mode<synchronous>, transform_indices = @transform_1, window_bounds = array<i64: 8, 128>}, {pipeline_mode = #tpu.pipeline_mode<synchronous>, transform_indices = @transform_2, window_bounds = array<i64: 1, 128>}, {pipeline_mode = #tpu.pipeline_mode<synchronous>, transform_indices = @transform_3, window_bounds = array<i64: 128, 32>}, {pipeline_mode = #tpu.pipeline_mode<synchronous>, transform_indices = @transform_4, window_bounds = array<i64: 1, 32>}, {transform_indices = @transform_5, window_bounds = array<i64: 16, 32>}]} {
    %c0 = arith.constant 0 : index
    %c0_0 = arith.constant 0 : index
    %0 = vector.load %arg1[%c0, %c0_0] : memref<16x8xf32, #tpu.memory_space<vmem>>, vector<16x8xf32>
    %c0_1 = arith.constant 0 : index
    %c0_2 = arith.constant 0 : index
    %1 = vector.load %arg2[%c0_1, %c0_2] : memref<8x128xf32, #tpu.memory_space<vmem>>, vector<8x128xf32>
    %cst = arith.constant dense<0.000000e+00> : vector<16x128xf32>
    %2 = tpu.matmul %0, %1, %cst {dimension_numbers = #tpu.dot_dimension_numbers<[1], [0], [0], [1], [0, 0, 1, 1], [], []>} : vector<16x8xf32>, vector<8x128xf32>, vector<16x128xf32> -> vector<16x128xf32>
    %c0_3 = arith.constant 0 : index
    %c0_4 = arith.constant 0 : index
    %3 = vector.load %arg3[%c0_3, %c0_4] : memref<1x128xf32, #tpu.memory_space<vmem>>, vector<1x128xf32>
    %4 = vector.broadcast %3 : vector<1x128xf32> to vector<16x128xf32>
    %5 = arith.addf %2, %4 : vector<16x128xf32>
    %cst_5 = arith.constant 0.000000e+00 : f32
    %6 = vector.broadcast %cst_5 : f32 to vector<16x128xf32>
    %7 = arith.maximumf %5, %6 : vector<16x128xf32>
    %c0_6 = arith.constant 0 : index
    %c0_7 = arith.constant 0 : index
    %8 = vector.load %arg4[%c0_6, %c0_7] : memref<128x32xf32, #tpu.memory_space<vmem>>, vector<128x32xf32>
    %cst_8 = arith.constant dense<0.000000e+00> : vector<16x32xf32>
    %9 = tpu.matmul %7, %8, %cst_8 {dimension_numbers = #tpu.dot_dimension_numbers<[1], [0], [0], [1], [0, 0, 1, 1], [], []>} : vector<16x128xf32>, vector<128x32xf32>, vector<16x32xf32> -> vector<16x32xf32>
    %c0_9 = arith.constant 0 : index
    %c0_10 = arith.constant 0 : index
    %10 = vector.load %arg5[%c0_9, %c0_10] : memref<1x32xf32, #tpu.memory_space<vmem>>, vector<1x32xf32>
    %11 = vector.broadcast %10 : vector<1x32xf32> to vector<16x32xf32>
    %12 = arith.addf %9, %11 : vector<16x32xf32>
    %c0_11 = arith.constant 0 : index
    %c0_12 = arith.constant 0 : index
    %13 = vector.load %arg6[%c0_11, %c0_12] : memref<16x32xf32, #tpu.memory_space<vmem>>, vector<16x32xf32>
    tpu.vector_store %arg6[%c0_11, %c0_12], %12 {strides = array<i32>} : memref<16x32xf32, #tpu.memory_space<vmem>>, vector<16x32xf32>,
    return
  }
  func.func @transform_0(%arg0: i32) -> (i32, i32) {
    %c0_i32 = arith.constant 0 : i32
    %c0_i32_0 = arith.constant 0 : i32
    return %arg0, %c0_i32 : i32, i32
  }
  func.func @transform_1(%arg0: i32) -> (i32, i32) {
    %c0_i32 = arith.constant 0 : i32
    %c0_i32_0 = arith.constant 0 : i32
    %c0_i32_1 = arith.constant 0 : i32
    return %c0_i32, %c0_i32_0 : i32, i32
  }
  func.func @transform_2(%arg0: i32) -> (i32, i32) {
    %c0_i32 = arith.constant 0 : i32
    %c0_i32_0 = arith.constant 0 : i32
    %c0_i32_1 = arith.constant 0 : i32
    return %c0_i32, %c0_i32_0 : i32, i32
  }
  func.func @transform_3(%arg0: i32) -> (i32, i32) {
    %c0_i32 = arith.constant 0 : i32
    %c0_i32_0 = arith.constant 0 : i32
    %c0_i32_1 = arith.constant 0 : i32
    return %c0_i32, %c0_i32_0 : i32, i32
  }
  func.func @transform_4(%arg0: i32) -> (i32, i32) {
    %c0_i32 = arith.constant 0 : i32
    %c0_i32_0 = arith.constant 0 : i32
    %c0_i32_1 = arith.constant 0 : i32
    return %c0_i32, %c0_i32_0 : i32, i32
  }
  func.func @transform_5(%arg0: i32) -> (i32, i32) {
    %c0_i32 = arith.constant 0 : i32
    %c0_i32_0 = arith.constant 0 : i32
    return %arg0, %c0_i32 : i32, i32
  }
}

</mosaic_0001>

<bundles_post_ra>
// kernel: linear_network_forward.1
= control target key start
LH: loop header
LB: loop body
LE: loop exit
PB: predicated region body
PF: predicated region fallthrough
CT: control target
= control target key end

     0   :  { %vm31_vm0 = vcmask 64512   ;;  %s464_s0 = inlined_call_operand.vmem [shape: f32[16,8], index: 0, kind: input, shape index: {}]   ;;  %s465_s1 = inlined_call_operand.vmem [shape: f32[8,128], index: 1, kind: input, shape index: {}]   ;;  %s466_s2 = inlined_call_operand.vmem [shape: f32[1,128], index: 2, kind: input, shape index: {}]   ;;  %s467_s3 = inlined_call_operand.vmem [shape: f32[128,32], index: 3, kind: input, shape index: {}]   ;;  %s468_s4 = inlined_call_operand.vmem [shape: f32[1,32], index: 4, kind: input, shape index: {}]   ;;  %s469_s5 = inlined_call_operand.hbm [shape: f32[16,32], index: 5, kind: output, shape index: {}]  }
   0x1   :  { %v23_v0 = vld [vmem:[%s465_s1] sm:$0xff]  ;;  %v22_v2 = vld [vmem:[%s464_s0 + $0x8] sm:$0xff]  ;;  %v117_v5 = vld [vmem:[%s467_s3 + $0x10] sm:$0xff] }
   0x2   :  { %v21_v1 = vld [vmem:[%s464_s0] sm:$0xff]  ;;  %257 = vmatprep.subr.mxu0 %v23_v0  ;;  %v116_v4 = vld [vmem:[%s467_s3 + $0x8] sm:$0xff]  ;;  %v118_v7 = vld [vmem:[%s467_s3 + $0x18] sm:$0xff] }
   0x3   :  { %259 = vmatprep.mubr.msk.f32.mxu0 %vm31_vm0, %v21_v1  ;;  %v115_v3 = vld [vmem:[%s467_s3] sm:$0xff]  ;;  %258 = vmatpush3.msra.mxu0 %v23_v0  ;;  %v301_v8 = vpack.c.bf16 %v118_v7, %v117_v5  ;;  %v120_v10 = vld [vmem:[%s467_s3 + $0x28] sm:$0xff] }
   0x4   :  { %v297_v6 = vpack.c.bf16 %v116_v4, %v115_v3  ;;  %260 = vmatmul.mubr.msk.f32.vlgmr.msra.gmra.mrb[0].mxu0 %vm31_vm0, %v22_v2  ;;  %v119_v9 = vld [vmem:[%s467_s3 + $0x20] sm:$0xff] }
   0x6   :  { %298 = vmatprep.subr.bf16.mxu1 %v297_v6 }
   0x7   :  { %300 = vmatpush3.bf16.msra.mxu1 %v297_v6 }
   0x8   :  { %10 = vsyncpa [#allocation3], 0  ;;  %302 = vmatprep.subr.bf16.mxu1 %v301_v8  ;;  %v305_v11 = vpack.c.bf16 %v120_v10, %v119_v9  ;;  %v121_v12 = vld [vmem:[%s467_s3 + $0x30] sm:$0xff]  ;;  %v122_v13 = vld [vmem:[%s467_s3 + $0x38] sm:$0xff]  ;;  %vm213_vm1 = vcmask 261120  }
   0x9   :  { %v309_v14 = vpack.c.bf16 %v122_v13, %v121_v12  ;;  %v123_v15 = vld [vmem:[%s467_s3 + $0x40] sm:$0xff]  ;;  %v124_v16 = vld [vmem:[%s467_s3 + $0x48] sm:$0xff]  ;;  %v125_v18 = vld [vmem:[%s467_s3 + $0x50] sm:$0xff] }
   0xa   :  { %v313_v17 = vpack.c.bf16 %v124_v16, %v123_v15  ;;  %v126_v19 = vld [vmem:[%s467_s3 + $0x58] sm:$0xff]  ;;  %v127_v21 = vld [vmem:[%s467_s3 + $0x60] sm:$0xff]  ;;  %v128_v22 = vld [vmem:[%s467_s3 + $0x68] sm:$0xff] }
   0xb   :  { %304 = vmatpush3.bf16.msra.mxu1 %v301_v8  ;;  %v317_v20 = vpack.c.bf16 %v126_v19, %v125_v18  ;;  %v321_v23 = vpack.c.bf16 %v128_v22, %v127_v21  ;;  %v129_v24 = vld [vmem:[%s467_s3 + $0x70] sm:$0xff]  ;;  %v130_v25 = vld [vmem:[%s467_s3 + $0x78] sm:$0xff]  ;;  %v232_v27 = vld [vmem:[%s466_s2] ss:$0 sm:$0xff]  ;;  %s356_s3 = smov [#allocation2]  }
   0xc   :  { %306 = vmatprep.subr.bf16.mxu1 %v305_v11  ;;  %v325_v26 = vpack.c.bf16 %v130_v25, %v129_v24  ;;  %v235_v34 = vld [vmem:[%s468_s4] ss:$0 sm:$0xff]  ;;  %s221_s6 = sshll.u32 %s356_s3, 4  ;;  %s222_s6 = int_to_ptr.vmem [resolvable:$true] %s221_s6 }
   0xd   :  { %s332_s2 = scalar_lea.vmem %s222_s6, 256  ;;  %p337_p1 = scmp.lt.s32.totalorder %s222_s6, %s222_s6 }
   0xe   :  { %p333_p0 = scmp.ne.s32.totalorder %s222_s6, %s332_s2  ;;  %p338_p2 = scmp.lt.s32.totalorder %s332_s2, %s332_s2 }
   0xf   :  { %308 = vmatpush3.bf16.msra.mxu1 %v305_v11 }
  0x10   :  { %310 = vmatprep.subr.bf16.mxu1 %v309_v14  ;;  %p339_p3 = por %p338_p2, %p337_p1 }
  0x12   :  { %p340_p4 = pnand %p339_p3, %p333_p0 }
  0x13   :  { %312 = vmatpush3.bf16.msra.mxu1 %v309_v14 }
  0x14   :  { %314 = vmatprep.subr.bf16.mxu1 %v313_v17 }
  0x17   :  { %316 = vmatpush3.bf16.msra.mxu1 %v313_v17 }
  0x18   :  { %318 = vmatprep.subr.bf16.mxu1 %v317_v20 }
  0x1b   :  { %320 = vmatpush3.bf16.msra.mxu1 %v317_v20 }
  0x1c   :  { %322 = vmatprep.subr.bf16.mxu1 %v321_v23 }
  0x1f   :  { %324 = vmatpush3.bf16.msra.mxu1 %v321_v23 }
  0x20   :  { %326 = vmatprep.subr.bf16.mxu1 %v325_v26 }
  0x23   :  { %328 = vmatpush3.bf16.msra.mxu1 %v325_v26 }
  0xd7   :  { %v261_v28 = vpop.f32.mrb[0].mxu0 }
  0xd8   :  { %v110_v29 = vadd.f32 %v261_v28, %v232_v27  ;;  %v104_v30 = vpop.f32.mrb[1].mxu0 }
  0xd9   :  { %v105_v31 = vadd.f32 %v232_v27, %v104_v30 }
  0xda   :  { %v114_v33 = vmax.f32 %v110_v29, 0.0 }
  0xdb   :  { %v113_v32 = vmax.f32 %v105_v31, 0.0 }
  0xdd   :  { %294 = vmatprep.mubr.f32.mxu1 %v113_v32 }
  0xde   :  { %295 = vmatmul.mubr.f32.vlgmr.msra.gmra.mrb[0].mxu1 %v114_v33 }
 0x1b1   :  { %v296_v35 = vpop.f32.mrb[0].mxu1 }
 0x1b2   :  { %v210_v36 = vadd.f32 %v296_v35, %v235_v34  ;;  %v204_v37 = vpop.f32.mrb[1].mxu1 }
 0x1b3   :  { %v205_v38 = vadd.f32 %v235_v34, %v204_v37 }
 0x1b4   :  { %215 = vst.msk [vmem:[#allocation2 + $0x8] sm:$0xff] %vm213_vm1, %v210_v36 }
 0x1b5   :  { %214 = vst.msk [vmem:[#allocation2] sm:$0xff] %vm213_vm1, %v205_v38 }
 0x1b6   :  { %343 = shalt.err (!%p340_p4)
}
 0x1b7   :  { %s344_s4 = scalar_lea.hbm %s469_s5, 256 }
 0x1b8   :  { %p345_p5 = scmp.ne.s32.totalorder %s469_s5, %s344_s4  ;;  %p348_p6 = scmp.lt.u32.totalorder %s344_s4, %s469_s5 }
 0x1ba   :  { %p350_p7 = pnand %p348_p6, %p345_p5 }
 0x1bc   :  { %353 = shalt.err (!%p350_p7)
}
 0x1bd   :  { %s357_s13 = smov 128   ;;  %s358_s14 = smov 8  }
 0x1be   :  { %227 = dma.vmem_to_hbm [thread:$0]  %s222_s6, 256, %s469_s5, [#allocation3], %s357_s13, %s357_s13, %s358_s14  }
 0x1bf   :  { %354 = dma.done.wait [#allocation3], 256  }
 0x1c0   :  { %355 = vsyncadd [#allocation3], 4294967040 }
 0x1c1   :  { %231 = vsyncpa [#allocation3], 1 }

</bundles_post_ra>
